<compile_context>
chip_gen: v6e
topology: v6e:2x2x1
jax: 0.10.0
libtpu: 0.0.40
codegen_flags: <defaults>
</compile_context>

<pallas_src>
import jax
import jax.numpy as jnp
from jax.experimental import pallas as pl
from jax.experimental.pallas import tpu as pltpu

TN_MAX = 8192     # max batch (lane) tile; sweepable 4096-16384, multiple of 128

# ColourSpaceNet default architecture: units=[7, 15, 7], nonlinearity GELU
IN_UNITS = [3, 7, 15, 7]
OUT_UNITS = [7, 15, 7, 3]
PAD_IN = [8, 8, 16, 8]     # per-layer padded fan_in  (sublane multiples of 8)
PAD_OUT = [8, 16, 8, 8]    # per-layer padded fan_out (live GELU rows per layer)

_INV_SQRT2 = 0.7071067811865476


def _gelu_exact(x):
    # PyTorch nn.GELU() default is the exact (erf-based) GELU.
    return 0.5 * x * (1.0 + jax.lax.erf(x * _INV_SQRT2))


def _mlp_kernel(x_ref,
                w1_ref, b1_ref, w2_ref, b2_ref, w3_ref, b3_ref, w4_ref, b4_ref,
                o_ref):
    tn = x_ref.shape[1]
    # Zero-pad the 3 input channels to 8 rows in value space (no VMEM scratch
    # round-trip).  Padded rows stay exactly zero through every layer because
    # the matching weight columns/rows and bias rows are zero and GELU(0) = 0.
    h = jnp.concatenate(
        [x_ref[...], jnp.zeros((5, tn), jnp.float32)], axis=0)      # (8, TN)
    for w_ref, b_ref in ((w1_ref, b1_ref), (w2_ref, b2_ref),
                         (w3_ref, b3_ref), (w4_ref, b4_ref)):
        # (M_pad, K_pad) @ (K_pad, TN) on the MXU (tiny K -> huge MXU slack);
        # bias-add + exact GELU only over the live per-layer padded rows,
        # which is the binding VPU work.
        h = jnp.dot(w_ref[...], h, preferred_element_type=jnp.float32)
        h = _gelu_exact(h + b_ref[...])
    o_ref[...] = h[0:3, :].astype(o_ref.dtype)


def _round_up(v, m):
    return ((v + m - 1) // m) * m


def _choose_tile(n):
    """Largest lane tile (multiple of 128, <= TN_MAX) giving >= 2 grid steps
    when possible; prefer an even step count (v7x 2-TC megacore balance)."""
    if n <= 128:
        return 128
    tn = min(TN_MAX, _round_up(-(-n // 2), 128))
    if tn >= n:
        return int(min(TN_MAX, _round_up(n, 128)))
    steps = -(-n // tn)
    if steps % 2:
        tn2 = _round_up(-(-n // (steps + 1)), 128)
        if tn2 >= 128 and (-(-n // tn2)) % 2 == 0:
            tn = tn2
    return int(tn)


def _forward_feature_major(x_t, params, tn):
    """x_t: (3, n_pad) f32 with n_pad % tn == 0.  Returns (3, n_pad) f32."""
    n_pad = x_t.shape[1]
    const_map = lambda i: (0, 0)
    in_specs = [pl.BlockSpec((3, tn), lambda i: (0, i))]
    flat_params = []
    for w, b in params:
        flat_params += [w, b]
        in_specs += [pl.BlockSpec(w.shape, const_map),
                     pl.BlockSpec(b.shape, const_map)]
    return pl.pallas_call(
        _mlp_kernel,
        out_shape=jax.ShapeDtypeStruct((3, n_pad), jnp.float32),
        grid_spec=pltpu.PrefetchScalarGridSpec(
            num_scalar_prefetch=0,
            grid=(n_pad // tn,),
            in_specs=in_specs,
            out_specs=pl.BlockSpec((3, tn), lambda i: (0, i)),
        ),
        compiler_params=pltpu.CompilerParams(
            dimension_semantics=("parallel",)),
    )(x_t, *flat_params)


@jax.jit
def colour_space_net_forward(x, params):
    """Batch-major interface matching the PyTorch module.
    x: (N, 3) float32; params: list of 4 padded (W, b); returns (N, 3)."""
    n = x.shape[0]
    tn = _choose_tile(n)
    n_pad = _round_up(n, tn)
    # One fused pad+transpose to feature-major (3, n_pad); only ~12*N bytes
    # each way hit HBM around the kernel.
    x_t = jnp.zeros((3, n_pad), jnp.float32).at[:, :n].set(x.T)
    out_t = _forward_feature_major(x_t, params, tn)
    return out_t[:, :n].T


@jax.jit
def colour_space_net_forward_feature_major(x_t, params):
    """Feature-major interface: x_t (3, N) -> (3, N).  Callers holding
    channel-major data avoid the wrapper transpose HBM round-trips."""
    n = x_t.shape[1]
    tn = _choose_tile(n)
    n_pad = _round_up(n, tn)
    if n_pad != n:
        x_t = jnp.zeros((3, n_pad), jnp.float32).at[:, :n].set(x_t)
    out_t = _forward_feature_major(x_t, params, tn)
    return out_t[:, :n]


def pad_params(raw_params):
    """raw_params: list of 4 (W (out,in), b (out,)) in PyTorch orientation.
    Returns per-layer zero-padded (W_pad (PAD_OUT, PAD_IN), b_pad (PAD_OUT,1)).
    Padding is re-zeroed here so externally loaded checkpoints are safe."""
    padded = []
    for i, (w, b) in enumerate(raw_params):
        fo, fi = OUT_UNITS[i], IN_UNITS[i]
        w_pad = jnp.zeros((PAD_OUT[i], PAD_IN[i]), jnp.float32)
        w_pad = w_pad.at[:fo, :fi].set(jnp.asarray(w, jnp.float32))
        b_pad = jnp.zeros((PAD_OUT[i], 1), jnp.float32)
        b_pad = b_pad.at[:fo, 0].set(jnp.asarray(b, jnp.float32))
        padded.append((w_pad, b_pad))
    return padded


def init_params(key):
    """Deterministic init mimicking nn.Linear (U[-1/sqrt(fan_in), ...])."""
    raw = []
    for fan_in, fan_out in zip(IN_UNITS, OUT_UNITS):
        key, kw, kb = jax.random.split(key, 3)
        bound = 1.0 / jnp.sqrt(jnp.float32(fan_in))
        w = jax.random.uniform(kw, (fan_out, fan_in), jnp.float32, -bound, bound)
        b = jax.random.uniform(kb, (fan_out,), jnp.float32, -bound, bound)
        raw.append((w, b))
    return pad_params(raw)


def _reference_forward(x, params):
    # Pure-JAX reference (unpadded math, batch-major, highest-precision dot).
    h = x
    for i, (w_pad, b_pad) in enumerate(params):
        fi, fo = IN_UNITS[i], OUT_UNITS[i]
        w = w_pad[:fo, :fi]          # (out, in)
        b = b_pad[:fo, 0]
        h = jnp.dot(h, w.T, precision=jax.lax.Precision.HIGHEST) + b
        h = _gelu_exact(h)
    return h


if __name__ == "__main__":
    key = jax.random.PRNGKey(0)
    kx, kp = jax.random.split(key)

    # Small batch of colour triplets; deliberately not a multiple of 128 and
    # sized so the grid has 2 steps (tn=256 -> n_pad=512).
    N = 300
    x = jax.random.uniform(kx, (N, 3), jnp.float32)   # colour values in [0, 1)

    params = init_params(kp)

    out = colour_space_net_forward(x, params)
    out = jax.block_until_ready(out)

    ref = _reference_forward(x, params)
    assert out.shape == (N, 3)
    assert jnp.allclose(out, ref, atol=1e-5, rtol=1e-4), "mismatch vs reference"

    print("KERNEL_OK")
</pallas_src>

<mosaic_0001>
module attributes {stable_mosaic.version = 11 : i64} {
  func.func @_mlp_kernel(%arg0: i32, %arg1: memref<3x256xf32, #tpu.memory_space<vmem>>, %arg2: memref<8x8xf32, #tpu.memory_space<vmem>>, %arg3: memref<8x1xf32, #tpu.memory_space<vmem>>, %arg4: memref<16x8xf32, #tpu.memory_space<vmem>>, %arg5: memref<16x1xf32, #tpu.memory_space<vmem>>, %arg6: memref<8x16xf32, #tpu.memory_space<vmem>>, %arg7: memref<8x1xf32, #tpu.memory_space<vmem>>, %arg8: memref<8x8xf32, #tpu.memory_space<vmem>>, %arg9: memref<8x1xf32, #tpu.memory_space<vmem>>, %arg10: memref<3x256xf32, #tpu.memory_space<vmem>>) attributes {dimension_semantics = [#tpu.dimension_semantics<parallel>], iteration_bounds = array<i64: 2>, scalar_prefetch = 0 : i64, scratch_operands = 0 : i64, tpu.core_type = #tpu.core_type<tc>, window_params = [{transform_indices = @transform_0, window_bounds = array<i64: 3, 256>}, {pipeline_mode = #tpu.pipeline_mode<synchronous>, transform_indices = @transform_1, window_bounds = array<i64: 8, 8>}, {pipeline_mode = #tpu.pipeline_mode<synchronous>, transform_indices = @transform_2, window_bounds = array<i64: 8, 1>}, {pipeline_mode = #tpu.pipeline_mode<synchronous>, transform_indices = @transform_3, window_bounds = array<i64: 16, 8>}, {pipeline_mode = #tpu.pipeline_mode<synchronous>, transform_indices = @transform_4, window_bounds = array<i64: 16, 1>}, {pipeline_mode = #tpu.pipeline_mode<synchronous>, transform_indices = @transform_5, window_bounds = array<i64: 8, 16>}, {pipeline_mode = #tpu.pipeline_mode<synchronous>, transform_indices = @transform_6, window_bounds = array<i64: 8, 1>}, {pipeline_mode = #tpu.pipeline_mode<synchronous>, transform_indices = @transform_7, window_bounds = array<i64: 8, 8>}, {pipeline_mode = #tpu.pipeline_mode<synchronous>, transform_indices = @transform_8, window_bounds = array<i64: 8, 1>}, {transform_indices = @transform_9, window_bounds = array<i64: 3, 256>}]} {
    %c0 = arith.constant 0 : index
    %c0_0 = arith.constant 0 : index
    %0 = vector.load %arg1[%c0, %c0_0] : memref<3x256xf32, #tpu.memory_space<vmem>>, vector<3x256xf32>
    %cst = arith.constant 0.000000e+00 : f32
    %1 = vector.broadcast %cst : f32 to vector<5x256xf32>
    %2 = tpu.concatenate %0, %1 in 0 : vector<3x256xf32>, vector<5x256xf32> -> vector<8x256xf32>
    %c0_1 = arith.constant 0 : index
    %c0_2 = arith.constant 0 : index
    %3 = vector.load %arg2[%c0_1, %c0_2] : memref<8x8xf32, #tpu.memory_space<vmem>>, vector<8x8xf32>
    %cst_3 = arith.constant dense<0.000000e+00> : vector<8x256xf32>
    %4 = tpu.matmul %3, %2, %cst_3 {dimension_numbers = #tpu.dot_dimension_numbers<[1], [0], [0], [1], [0, 0, 1, 1], [], []>} : vector<8x8xf32>, vector<8x256xf32>, vector<8x256xf32> -> vector<8x256xf32>
    %c0_4 = arith.constant 0 : index
    %c0_5 = arith.constant 0 : index
    %5 = vector.load %arg3[%c0_4, %c0_5] : memref<8x1xf32, #tpu.memory_space<vmem>>, vector<8x1xf32>
    %6 = vector.broadcast %5 : vector<8x1xf32> to vector<8x256xf32>
    %7 = arith.addf %4, %6 : vector<8x256xf32>
    %cst_6 = arith.constant 5.000000e-01 : f32
    %8 = vector.broadcast %cst_6 : f32 to vector<8x256xf32>
    %9 = arith.mulf %8, %7 : vector<8x256xf32>
    %cst_7 = arith.constant 0.707106769 : f32
    %10 = vector.broadcast %cst_7 : f32 to vector<8x256xf32>
    %11 = arith.mulf %7, %10 : vector<8x256xf32>
    %12 = math.erf %11 : vector<8x256xf32>
    %cst_8 = arith.constant 1.000000e+00 : f32
    %13 = vector.broadcast %cst_8 : f32 to vector<8x256xf32>
    %14 = arith.addf %13, %12 : vector<8x256xf32>
    %15 = arith.mulf %9, %14 : vector<8x256xf32>
    %c0_9 = arith.constant 0 : index
    %c0_10 = arith.constant 0 : index
    %16 = vector.load %arg4[%c0_9, %c0_10] : memref<16x8xf32, #tpu.memory_space<vmem>>, vector<16x8xf32>
    %cst_11 = arith.constant dense<0.000000e+00> : vector<16x256xf32>
    %17 = tpu.matmul %16, %15, %cst_11 {dimension_numbers = #tpu.dot_dimension_numbers<[1], [0], [0], [1], [0, 0, 1, 1], [], []>} : vector<16x8xf32>, vector<8x256xf32>, vector<16x256xf32> -> vector<16x256xf32>
    %c0_12 = arith.constant 0 : index
    %c0_13 = arith.constant 0 : index
    %18 = vector.load %arg5[%c0_12, %c0_13] : memref<16x1xf32, #tpu.memory_space<vmem>>, vector<16x1xf32>
    %19 = vector.broadcast %18 : vector<16x1xf32> to vector<16x256xf32>
    %20 = arith.addf %17, %19 : vector<16x256xf32>
    %cst_14 = arith.constant 5.000000e-01 : f32
    %21 = vector.broadcast %cst_14 : f32 to vector<16x256xf32>
    %22 = arith.mulf %21, %20 : vector<16x256xf32>
    %cst_15 = arith.constant 0.707106769 : f32
    %23 = vector.broadcast %cst_15 : f32 to vector<16x256xf32>
    %24 = arith.mulf %20, %23 : vector<16x256xf32>
    %25 = math.erf %24 : vector<16x256xf32>
    %cst_16 = arith.constant 1.000000e+00 : f32
    %26 = vector.broadcast %cst_16 : f32 to vector<16x256xf32>
    %27 = arith.addf %26, %25 : vector<16x256xf32>
    %28 = arith.mulf %22, %27 : vector<16x256xf32>
    %c0_17 = arith.constant 0 : index
    %c0_18 = arith.constant 0 : index
    %29 = vector.load %arg6[%c0_17, %c0_18] : memref<8x16xf32, #tpu.memory_space<vmem>>, vector<8x16xf32>
    %cst_19 = arith.constant dense<0.000000e+00> : vector<8x256xf32>
    %30 = tpu.matmul %29, %28, %cst_19 {dimension_numbers = #tpu.dot_dimension_numbers<[1], [0], [0], [1], [0, 0, 1, 1], [], []>} : vector<8x16xf32>, vector<16x256xf32>, vector<8x256xf32> -> vector<8x256xf32>
    %c0_20 = arith.constant 0 : index
    %c0_21 = arith.constant 0 : index
    %31 = vector.load %arg7[%c0_20, %c0_21] : memref<8x1xf32, #tpu.memory_space<vmem>>, vector<8x1xf32>
    %32 = vector.broadcast %31 : vector<8x1xf32> to vector<8x256xf32>
    %33 = arith.addf %30, %32 : vector<8x256xf32>
    %cst_22 = arith.constant 5.000000e-01 : f32
    %34 = vector.broadcast %cst_22 : f32 to vector<8x256xf32>
    %35 = arith.mulf %34, %33 : vector<8x256xf32>
    %cst_23 = arith.constant 0.707106769 : f32
    %36 = vector.broadcast %cst_23 : f32 to vector<8x256xf32>
    %37 = arith.mulf %33, %36 : vector<8x256xf32>
    %38 = math.erf %37 : vector<8x256xf32>
    %cst_24 = arith.constant 1.000000e+00 : f32
    %39 = vector.broadcast %cst_24 : f32 to vector<8x256xf32>
    %40 = arith.addf %39, %38 : vector<8x256xf32>
    %41 = arith.mulf %35, %40 : vector<8x256xf32>
    %c0_25 = arith.constant 0 : index
    %c0_26 = arith.constant 0 : index
    %42 = vector.load %arg8[%c0_25, %c0_26] : memref<8x8xf32, #tpu.memory_space<vmem>>, vector<8x8xf32>
    %cst_27 = arith.constant dense<0.000000e+00> : vector<8x256xf32>
    %43 = tpu.matmul %42, %41, %cst_27 {dimension_numbers = #tpu.dot_dimension_numbers<[1], [0], [0], [1], [0, 0, 1, 1], [], []>} : vector<8x8xf32>, vector<8x256xf32>, vector<8x256xf32> -> vector<8x256xf32>
    %c0_28 = arith.constant 0 : index
    %c0_29 = arith.constant 0 : index
    %44 = vector.load %arg9[%c0_28, %c0_29] : memref<8x1xf32, #tpu.memory_space<vmem>>, vector<8x1xf32>
    %45 = vector.broadcast %44 : vector<8x1xf32> to vector<8x256xf32>
    %46 = arith.addf %43, %45 : vector<8x256xf32>
    %cst_30 = arith.constant 5.000000e-01 : f32
    %47 = vector.broadcast %cst_30 : f32 to vector<8x256xf32>
    %48 = arith.mulf %47, %46 : vector<8x256xf32>
    %cst_31 = arith.constant 0.707106769 : f32
    %49 = vector.broadcast %cst_31 : f32 to vector<8x256xf32>
    %50 = arith.mulf %46, %49 : vector<8x256xf32>
    %51 = math.erf %50 : vector<8x256xf32>
    %cst_32 = arith.constant 1.000000e+00 : f32
    %52 = vector.broadcast %cst_32 : f32 to vector<8x256xf32>
    %53 = arith.addf %52, %51 : vector<8x256xf32>
    %54 = arith.mulf %48, %53 : vector<8x256xf32>
    %55 = vector.extract_strided_slice %54 {offsets = [0, 0], sizes = [3, 256], strides = [1, 1]} : vector<8x256xf32> to vector<3x256xf32>
    %c0_33 = arith.constant 0 : index
    %c0_34 = arith.constant 0 : index
    %56 = vector.load %arg10[%c0_33, %c0_34] : memref<3x256xf32, #tpu.memory_space<vmem>>, vector<3x256xf32>
    tpu.vector_store %arg10[%c0_33, %c0_34], %55 {strides = array<i32>} : memref<3x256xf32, #tpu.memory_space<vmem>>, vector<3x256xf32>,
    return
  }
  func.func @transform_0(%arg0: i32) -> (i32, i32) {
    %c0_i32 = arith.constant 0 : i32
    %c0_i32_0 = arith.constant 0 : i32
    return %c0_i32, %arg0 : i32, i32
  }
  func.func @transform_1(%arg0: i32) -> (i32, i32) {
    %c0_i32 = arith.constant 0 : i32
    %c0_i32_0 = arith.constant 0 : i32
    %c0_i32_1 = arith.constant 0 : i32
    return %c0_i32, %c0_i32_0 : i32, i32
  }
  func.func @transform_2(%arg0: i32) -> (i32, i32) {
    %c0_i32 = arith.constant 0 : i32
    %c0_i32_0 = arith.constant 0 : i32
    %c0_i32_1 = arith.constant 0 : i32
    return %c0_i32, %c0_i32_0 : i32, i32
  }
  func.func @transform_3(%arg0: i32) -> (i32, i32) {
    %c0_i32 = arith.constant 0 : i32
    %c0_i32_0 = arith.constant 0 : i32
    %c0_i32_1 = arith.constant 0 : i32
    return %c0_i32, %c0_i32_0 : i32, i32
  }
  func.func @transform_4(%arg0: i32) -> (i32, i32) {
    %c0_i32 = arith.constant 0 : i32
    %c0_i32_0 = arith.constant 0 : i32
    %c0_i32_1 = arith.constant 0 : i32
    return %c0_i32, %c0_i32_0 : i32, i32
  }
  func.func @transform_5(%arg0: i32) -> (i32, i32) {
    %c0_i32 = arith.constant 0 : i32
    %c0_i32_0 = arith.constant 0 : i32
    %c0_i32_1 = arith.constant 0 : i32
    return %c0_i32, %c0_i32_0 : i32, i32
  }
  func.func @transform_6(%arg0: i32) -> (i32, i32) {
    %c0_i32 = arith.constant 0 : i32
    %c0_i32_0 = arith.constant 0 : i32
    %c0_i32_1 = arith.constant 0 : i32
    return %c0_i32, %c0_i32_0 : i32, i32
  }
  func.func @transform_7(%arg0: i32) -> (i32, i32) {
    %c0_i32 = arith.constant 0 : i32
    %c0_i32_0 = arith.constant 0 : i32
    %c0_i32_1 = arith.constant 0 : i32
    return %c0_i32, %c0_i32_0 : i32, i32
  }
  func.func @transform_8(%arg0: i32) -> (i32, i32) {
    %c0_i32 = arith.constant 0 : i32
    %c0_i32_0 = arith.constant 0 : i32
    %c0_i32_1 = arith.constant 0 : i32
    return %c0_i32, %c0_i32_0 : i32, i32
  }
  func.func @transform_9(%arg0: i32) -> (i32, i32) {
    %c0_i32 = arith.constant 0 : i32
    %c0_i32_0 = arith.constant 0 : i32
    return %c0_i32, %arg0 : i32, i32
  }
}

</mosaic_0001>

<bundles_post_ra>
// kernel: colour_space_net_forward.1
= control target key start
LH: loop header
LB: loop body
LE: loop exit
PB: predicated region body
PF: predicated region fallthrough
CT: control target
= control target key end

     0   :  { %s907_s30 = smov 0   ;;  %s970_s0 = inlined_call_operand.vmem [shape: f32[3,512], index: 0, kind: input, shape index: {}]   ;;  %s971_s1 = inlined_call_operand.vmem [shape: f32[8,8], index: 1, kind: input, shape index: {}]   ;;  %s972_s2 = inlined_call_operand.vmem [shape: f32[8,1], index: 2, kind: input, shape index: {}]   ;;  %s973_s3 = inlined_call_operand.vmem [shape: f32[16,8], index: 3, kind: input, shape index: {}]   ;;  %s974_s4 = inlined_call_operand.vmem [shape: f32[16,1], index: 4, kind: input, shape index: {}]   ;;  %s975_s5 = inlined_call_operand.vmem [shape: f32[8,16], index: 5, kind: input, shape index: {}]   ;;  %s976_s6 = inlined_call_operand.vmem [shape: f32[8,1], index: 6, kind: input, shape index: {}]   ;;  %s977_s7 = inlined_call_operand.vmem [shape: f32[8,8], index: 7, kind: input, shape index: {}]   ;;  %s978_s8 = inlined_call_operand.vmem [shape: f32[8,1], index: 8, kind: input, shape index: {}]   ;;  %s979_s9 = inlined_call_operand.vmem [shape: f32[3,512], index: 9, kind: output, shape index: {}]  }
   0x1 LB: > { %s796_s10 = sadd.s32 4294967295, %s853_s30   ;;  %p800_p0 = scmp.ge.s32.totalorder %s853_s30, 1  ;;  %s853_s30 = sphi %s907_s30, %s19_s30  }
   0x2   : > { %p288_p1 = scmp.lt.s32.totalorder %s853_s30, 3 }
   0x4   : > { %p289_p2 = pnand %p800_p0, %p288_p1 }
   0x5   : > { %s801_s11 = sshll.u32 (!%p289_p2), %s796_s10, 1 }
   0x6   : > { %292 = sbr.rel (%p289_p2) target bundleno = 902 (0x386), region = 56  ;;  %p325_p3 = scmp.lt.s32.totalorder (!%p289_p2), %s801_s11, 3 }
   0xb   : > { %v855_v0 = vmov 0.0   ;;  %v856_v1 = vmov 0   ;;  %v344_v2 = vld [vmem:[%s972_s2] sm:$0xff]  ;;  %s981_s11 = smov (!%p325_p3, %s801_s11), 3  ;;  %v438_v3 = vld [vmem:[%s974_s4 + $0x8] sm:$0xff]  ;;  %vm340_vm0 = vcmask 1042432  }
   0xc   : > { %418 = vmatprep.mubr.f32.mxu0 %v855_v0  ;;  %824 = vset.pattern.permute.xlu0 %v856_v1  ;;  %s802_s16 = sshll.u32 %s981_s11, 2  ;;  %v645_v5 = vld [vmem:[%s978_s8] sm:$0xff]  ;;  %vm350_vm1 = vcmask 64512   ;;  %v436_v26 = vld [vmem:[%s973_s3 + $0x8] sm:$0xff]  ;;  %vm559_vm2 = vcmask 130048  }
   0xd   : > { %347 = vperm.xlu0 %824, %v344_v2   ;;  %519 = vmatprep.mubr.f32.mxu1 %v855_v0  ;;  %s328_s19 = scalar_lea.vmem %s970_s0, %s802_s16  ;;  %v343_v7 = vld [vmem:[%s971_s1] sm:$0xff]  ;;  %s334_s20 = scalar_lea.vmem %s979_s9, %s802_s16 }
   0xe   : > { %825 = vset.pattern.permute.xlu1 %v856_v1  ;;  %v336_v4 = vld [vmem:[%s328_s19] sm:$0x77] }
   0xf   : > { %v338_v6 = vcombine.high %v336_v4, %v336_v4  ;;  %v437_v8 = vld [vmem:[%s974_s4] sm:$0xff] }
  0x10   : > { %441 = vperm.xlu1 %825, %v437_v8   ;;  %v553_v9 = vld [vmem:[%s976_s6] sm:$0xff] }
  0x11   : > { %446 = vperm.xlu0 %824, %v438_v3   ;;  %805 = vmatprep.subr.msk.mxu0 %vm340_vm0, %v338_v6  ;;  %v435_v25 = vld [vmem:[%s973_s3] sm:$0xff] }
  0x12   : > { %806 = vmatpush1.msk.msra.mxu0 %vm340_vm0, %v336_v4  ;;  %v552_v57 = vld [vmem:[%s975_s5] sm:$0xff] }
  0x13   : > { %807 = vmatmul.mubr.msk.f32.vlgmr.msra.gmra.mxu0 %vm350_vm1, %v343_v7 }
  0x14   : > { %627 = vmatprep.mubr.f32.mxu0 %v855_v0  ;;  %556 = vperm.xlu1 %825, %v553_v9  }
  0x15   : > { %648 = vperm.xlu0 %824, %v645_v5  }
  0x88   : > { %v348_v10 = vpop.permute.xlu0 %347 }
  0x8b   : > { %v442_v27 = vpop.permute.xlu1 %441 }
  0x8c   : > { %v447_v32 = vpop.permute.xlu0 %446 }
  0x8f   : > { %v557_v58 = vpop.permute.xlu1 %556 }
  0xd3   : > { %v420_v11 = vpop.f32.mrf.mxu0 }
  0xd4   : > { %v421_v12 = vadd.f32 %v420_v11, %v348_v10 }
  0xd5   : > { %v422_v13 = vpop.f32.mrf.mxu0 }
  0xd6   : > { %v427_v14 = vmul.f32 0.70710677, %v421_v12  ;;  %v423_v15 = vadd.f32 %v422_v13, %v348_v10  ;;  %v425_v22 = vmul.f32 0.5, %v421_v12  ;;  %v649_v10 = vpop.permute.xlu0 %648 }
  0xd8   : > { %827 = verf.f32 %v427_v14  ;;  %v428_v16 = vmul.f32 0.70710677, %v423_v15  ;;  %v426_v20 = vmul.f32 0.5, %v423_v15 }
  0xda   : > { %829 = verf.f32 %v428_v16 }
  0xe5   : > { %v828_v17 = vpop.eup %827 }
  0xe6   : > { %v431_v19 = vadd.f32 1.0, %v828_v17 }
  0xe7   : > { %v830_v18 = vpop.eup %829 }
  0xe8   : > { %v432_v21 = vadd.f32 1.0, %v830_v18  ;;  %v433_v24 = vmul.f32 %v431_v19, %v425_v22 }
  0xea   : > { %v434_v23 = vmul.f32 %v432_v21, %v426_v20 }
  0xec   : > { %485 = vmatprep.subr.mxu1 %v434_v23 }
  0xed   : > { %486 = vmatpush1.msra.mxu1 %v433_v24 }
  0xee   : > { %808 = vmatmul.mubr.msk.f32.vlgmr.msra.gmra.mxu1 %vm350_vm1, %v435_v25 }
  0xef   : > { %525 = vmatprep.mubr.f32.mxu1 %v855_v0 }
  0xf2   : > { %809 = vmatmul.mubr.msk.f32.gmra.mxu1 %vm350_vm1, %v436_v26 }
 0x1ae   : > { %v521_v28 = vpop.f32.mrf.mxu1 }
 0x1af   : > { %v522_v29 = vadd.f32 %v521_v28, %v442_v27 }
 0x1b0   : > { %v523_v30 = vpop.f32.mrf.mxu1 }
 0x1b1   : > { %v524_v31 = vadd.f32 %v523_v30, %v442_v27  ;;  %v536_v36 = vmul.f32 0.70710677, %v522_v29  ;;  %v532_v53 = vmul.f32 0.5, %v522_v29 }
 0x1b2   : > { %v527_v33 = vpop.f32.mrf.mxu1 }
 0x1b3   : > { %v537_v34 = vmul.f32 0.70710677, %v524_v31  ;;  %v528_v35 = vadd.f32 %v527_v33, %v447_v32  ;;  %v533_v51 = vmul.f32 0.5, %v524_v31 }
 0x1b4   : > { %v529_v37 = vpop.f32.mrf.mxu1 }
 0x1b5   : > { %v538_v38 = vmul.f32 0.70710677, %v528_v35  ;;  %v530_v39 = vadd.f32 %v529_v37, %v447_v32  ;;  %831 = verf.f32 %v537_v34  ;;  %v534_v50 = vmul.f32 0.5, %v528_v35 }
 0x1b7   : > { %833 = verf.f32 %v538_v38  ;;  %v539_v40 = vmul.f32 0.70710677, %v530_v39  ;;  %v535_v46 = vmul.f32 0.5, %v530_v39 }
 0x1b8   : > { %835 = verf.f32 %v536_v36 }
 0x1b9   : > { %837 = verf.f32 %v539_v40 }
 0x1c2   : > { %v832_v41 = vpop.eup %831 }
 0x1c3   : > { %v545_v48 = vadd.f32 1.0, %v832_v41 }
 0x1c4   : > { %v834_v42 = vpop.eup %833 }
 0x1c5   : > { %v836_v43 = vpop.eup %835  ;;  %v546_v45 = vadd.f32 1.0, %v834_v42  ;;  %v549_v55 = vmul.f32 %v545_v48, %v533_v51 }
 0x1c6   : > { %v838_v44 = vpop.eup %837  ;;  %v544_v49 = vadd.f32 1.0, %v836_v43 }
 0x1c7   : > { %v547_v47 = vadd.f32 1.0, %v838_v44  ;;  %v550_v54 = vmul.f32 %v546_v45, %v534_v50 }
 0x1c8   : > { %v548_v56 = vmul.f32 %v544_v49, %v532_v53 }
 0x1c9   : > { %v551_v52 = vmul.f32 %v547_v47, %v535_v46 }
 0x1cb   : > { %591 = vmatprep.subr.mxu0 %v551_v52 }
 0x1cc   : > { %592 = vmatpush1.msra.mxu0 %v550_v54 }
 0x1cd   : > { %593 = vmatprep.subr.mxu0 %v549_v55 }
 0x1ce   : > { %594 = vmatpush1.msra.mxu0 %v548_v56 }
 0x1cf   : > { %810 = vmatmul.mubr.msk.f32.vlgmr.msra.gmra.mxu0 %vm559_vm2, %v552_v57 }
 0x1d0   : > { %718 = vmatprep.mubr.f32.mxu0 %v855_v0  ;;  %v644_v0 = vld [vmem:[%s977_s7] sm:$0xff] }
 0x28f   : > { %v629_v59 = vpop.f32.mrf.mxu0 }
 0x290   : > { %v630_v60 = vadd.f32 %v629_v59, %v557_v58 }
 0x291   : > { %v631_v61 = vpop.f32.mrf.mxu0 }
 0x292   : > { %v636_v62 = vmul.f32 0.70710677, %v630_v60  ;;  %v632_v63 = vadd.f32 %v631_v61, %v557_v58  ;;  %v634_v7 = vmul.f32 0.5, %v630_v60 }
 0x294   : > { %839 = verf.f32 %v636_v62  ;;  %v637_v1 = vmul.f32 0.70710677, %v632_v63  ;;  %v635_v5 = vmul.f32 0.5, %v632_v63 }
 0x296   : > { %841 = verf.f32 %v637_v1 }
 0x2a1   : > { %v840_v2 = vpop.eup %839 }
 0x2a2   : > { %v640_v4 = vadd.f32 1.0, %v840_v2 }
 0x2a3   : > { %v842_v3 = vpop.eup %841 }
 0x2a4   : > { %v641_v6 = vadd.f32 1.0, %v842_v3  ;;  %v642_v9 = vmul.f32 %v640_v4, %v634_v7 }
 0x2a6   : > { %v643_v8 = vmul.f32 %v641_v6, %v635_v5 }
 0x2a8   : > { %684 = vmatprep.subr.mxu0 %v643_v8 }
 0x2a9   : > { %685 = vmatpush1.msra.mxu0 %v642_v9 }
 0x2aa   : > { %811 = vmatmul.mubr.msk.f32.vlgmr.msra.gmra.mxu0 %vm350_vm1, %v644_v0 }
 0x36a   : > { %v720_v11 = vpop.f32.mrf.mxu0 }
 0x36b   : > { %v721_v12 = vadd.f32 %v720_v11, %v649_v10 }
 0x36c   : > { %v722_v13 = vpop.f32.mrf.mxu0 }
 0x36d   : > { %v727_v14 = vmul.f32 0.70710677, %v721_v12  ;;  %v723_v15 = vadd.f32 %v722_v13, %v649_v10  ;;  %v725_v20 = vmul.f32 0.5, %v721_v12 }
 0x36f   : > { %843 = verf.f32 %v727_v14  ;;  %v728_v16 = vmul.f32 0.70710677, %v723_v15  ;;  %v726_v21 = vmul.f32 0.5, %v723_v15 }
 0x371   : > { %845 = verf.f32 %v728_v16 }
 0x37c   : > { %v844_v17 = vpop.eup %843 }
 0x37d   : > { %v731_v18 = vadd.f32 1.0, %v844_v17 }
 0x37e   : > { %v846_v19 = vpop.eup %845 }
 0x37f   : > { %v732_v22 = vadd.f32 1.0, %v846_v19  ;;  %v733_v23 = vmul.f32 %v731_v18, %v725_v20 }
 0x381   : > { %v734_v24 = vmul.f32 %v732_v22, %v726_v21 }
 0x383   : > { %v737_v25 = vcombine.low %v733_v23, %v734_v24 }
 0x385   : > { %739 = vst [vmem:[%s334_s20] sm:$0x77] %v737_v25 }
 0x386 PF: > { %s19_s30 = sadd.s32 1, %s853_s30  }
 0x387   : > { %p16_p4 = scmp.ge.s32.totalorder %s19_s30, 4  }
 0x389   :  { %18 = sbr.rel (!%p16_p4) target bundleno = 1 (0x1), region = 86 }

</bundles_post_ra>
